<compile_context>
chip_gen: v7x
topology: tpu7x:2x2x1
jax: 0.10.0
libtpu: 0.0.40
codegen_flags: <defaults>
</compile_context>

<pallas_src>
import functools

import jax
import jax.numpy as jnp
from jax.experimental import pallas as pl
from jax.experimental.pallas import tpu as pltpu


def _act(name, x):
    if name is None:
        return x
    if name == "relu":
        return jnp.maximum(x, 0.0)
    if name == "relu6":
        return jnp.clip(x, 0.0, 6.0)
    if name == "gelu":
        return jax.nn.gelu(x)
    if name == "sigmoid":
        return jax.nn.sigmoid(x)
    if name == "silu":
        return jax.nn.silu(x)
    if name == "tanh":
        return jnp.tanh(x)
    # TODO(synk): add other torch.nn.functional activations as needed.
    raise ValueError(f"unsupported activation: {name}")


def _vmem_params():
    """Generation-aware (tile_budget_bytes, vmem_limit_cap_bytes)."""
    cap = 64 << 20                      # conservative default = v7x per-TC VMEM
    try:
        info = pltpu.get_tpu_info()
        cap = int(getattr(info, "vmem_capacity_bytes", cap)) or cap
    except Exception:
        pass
    if cap >= (96 << 20):               # v5e / v6e: 128 MiB physical
        return 24 << 20, 96 << 20
    return 12 << 20, 48 << 20           # v7x: 64 MiB physical, keep headroom


def _mul_add(w, x, b, use_mxu):
    """(Cout, Cin) @ (Cin, M) + (Cout, 1) -> (Cout, M) in f32."""
    if use_mxu:
        return jnp.dot(w, x, preferred_element_type=jnp.float32) + b
    # Tiny contraction: unrolled VPU multiply-add chain (skip the MXU).
    xf = x.astype(jnp.float32)
    wf = w.astype(jnp.float32)
    cout, cin = wf.shape
    y = jnp.broadcast_to(b, (cout, xf.shape[-1]))
    for ci in range(cin):
        y = y + wf[:, ci:ci + 1] * xf[ci:ci + 1, :]
    return y


def _flat_kernel(x_ref, w_ref, b_ref, o_ref, *, activate, use_mxu):
    """Interior only: (Cin, TM) -> (Cout, TM)."""
    y = _mul_add(w_ref[...], x_ref[...], b_ref[...], use_mxu)
    o_ref[...] = _act(activate, y).astype(o_ref.dtype)


def _fused_pad_kernel(x_ref, w_ref, b_ref, pad_ref, o_ref, *,
                      H, W, padding, activate, use_mxu):
    """Whole image per step: (Cin, H*W) -> padded (Cout, Hp, Wp).

    x_ref:   (Cin, H*W)    flattened spatial on lanes
    w_ref:   (Cout, Cin)   BN-folded 1x1 conv weight
    b_ref:   (Cout, 1)     BN-folded bias (f32)
    pad_ref: (Cout, 1, 1)  activated pad_values (f32)
    o_ref:   (Cout, Hp, Wp)
    """
    cout = w_ref.shape[0]
    Hp, Wp = H + 2 * padding, W + 2 * padding
    y = _mul_add(w_ref[...], x_ref[...], b_ref[...], use_mxu)   # (Cout, H*W) f32
    y = _act(activate, y).astype(o_ref.dtype)
    pad_v = pad_ref[...].astype(o_ref.dtype)                    # (Cout, 1, 1)
    # Frame fill (whole block), then interior overwrite — both VMEM-side only;
    # the padded block is DMA'd back to HBM exactly once.
    o_ref[...] = jnp.broadcast_to(pad_v, (cout, Hp, Wp))
    for h in range(H):                                          # static offsets
        row = y[:, h * W:(h + 1) * W]                           # (Cout, W)
        o_ref[:, padding + h:padding + h + 1,
              padding:padding + W] = row[:, None, :]


def _select_spatial_tile(hw, cin, cout, in_bytes, out_bytes, budget_bytes):
    """Largest legal lane-dense spatial tile within a double-buffered budget."""
    def db_cost(tm):
        return 2 * tm * (cin * in_bytes + cout * out_bytes)

    # Full-array block is always legal; take it whenever it fits the budget
    # (regardless of 128-divisibility), or when there is no smaller choice.
    if hw <= 128 or db_cost(hw) <= budget_bytes:
        return hw
    for tm in (8192, 4096, 2048, 1024, 512, 256, 128):
        if tm <= hw and db_cost(tm) <= budget_bytes:
            return tm
    return 128          # nothing fits the budget: smallest legal tile


def rep_conv_pad_bn_forward(
    x_nchw,          # (N, Cin, H, W)
    conv_w,          # (Cout, Cin, 1, 1)
    conv_b,          # (Cout,)
    bn_gamma,        # (Cout,)
    bn_beta,         # (Cout,)
    bn_mean,         # (Cout,)
    bn_var,          # (Cout,)
    *,
    padding=1,
    eps=1e-5,
    activate=None,
):
    N, Cin, H, W = x_nchw.shape
    Cout = conv_w.shape[0]
    HW = H * W
    Hp, Wp = H + 2 * padding, W + 2 * padding

    # Eval-mode BN affine folded into the conv weight / bias.
    scale = bn_gamma / jnp.sqrt(bn_var + eps)             # (Cout,)
    shift = bn_beta - bn_mean * scale                     # (Cout,) == pad_values
    w_fold = conv_w.reshape(Cout, Cin) * scale[:, None]   # (Cout, Cin)
    b_fold = conv_b * scale + shift                       # (Cout,)

    # MXU whenever the contraction is big enough to matter; tiny channel counts
    # use the VPU FMA chain (hidden under the HBM-bound DMA either way).
    use_mxu = (Cin * Cout > 256) or (Cin > 16)
    if use_mxu and x_nchw.dtype == jnp.bfloat16:
        w_fold = w_fold.astype(jnp.bfloat16)   # narrow weight DMA; f32 MXU accumulate
    else:
        w_fold = w_fold.astype(jnp.float32)
    b2 = b_fold.reshape(Cout, 1).astype(jnp.float32)

    in_bytes = jnp.dtype(x_nchw.dtype).itemsize
    out_bytes = in_bytes
    w_bytes = jnp.dtype(w_fold.dtype).itemsize
    const_bytes = Cout * Cin * w_bytes + 2 * Cout * 4

    tile_budget, vmem_cap = _vmem_params()

    x3 = x_nchw.reshape(N, Cin, HW)     # free view: NCHW is already (N, C, H*W)

    # ------------------------------------------------------------------
    # Fused padded-output path: kernel writes frame + interior directly.
    # ------------------------------------------------------------------
    fused_cost = 2 * (Cin * HW * in_bytes + Cout * Hp * Wp * out_bytes) + 2 * const_bytes
    fused_ok = (padding > 0) and (H <= 128) and (fused_cost <= tile_budget)
    if fused_ok:
        pad_act = _act(activate, shift.astype(jnp.float32)).reshape(Cout, 1, 1)
        vmem_limit = int(min(vmem_cap, max(32 << 20, 2 * fused_cost + (1 << 20))))
        kernel = functools.partial(_fused_pad_kernel, H=H, W=W, padding=padding,
                                   activate=activate, use_mxu=use_mxu)
        return pl.pallas_call(
            kernel,
            out_shape=jax.ShapeDtypeStruct((N, Cout, Hp, Wp), x_nchw.dtype),
            grid_spec=pltpu.PrefetchScalarGridSpec(
                num_scalar_prefetch=0,
                grid=(N,),
                in_specs=[
                    pl.BlockSpec((None, Cin, HW), lambda n: (n, 0, 0)),
                    pl.BlockSpec((Cout, Cin), lambda n: (0, 0)),
                    pl.BlockSpec((Cout, 1), lambda n: (0, 0)),
                    pl.BlockSpec((Cout, 1, 1), lambda n: (0, 0, 0)),
                ],
                out_specs=pl.BlockSpec((None, Cout, Hp, Wp), lambda n: (n, 0, 0, 0)),
            ),
            compiler_params=pltpu.CompilerParams(
                dimension_semantics=("parallel",),
                vmem_limit_bytes=vmem_limit,
            ),
        )(x3, w_fold, b2, pad_act)

    # ------------------------------------------------------------------
    # Flat tiled interior path (padding == 0, or spatial too large to fuse).
    # ------------------------------------------------------------------
    tm = _select_spatial_tile(HW, Cin, Cout, in_bytes, out_bytes, tile_budget)
    num_m = pl.cdiv(HW, tm)
    per_step = tm * (Cin * in_bytes + Cout * out_bytes)
    need = 2 * per_step + 2 * const_bytes + (1 << 20)
    vmem_limit = int(min(vmem_cap, max(32 << 20, 2 * need)))

    kernel = functools.partial(_flat_kernel, activate=activate, use_mxu=use_mxu)
    out3 = pl.pallas_call(
        kernel,
        out_shape=jax.ShapeDtypeStruct((N, Cout, HW), x_nchw.dtype),
        grid_spec=pltpu.PrefetchScalarGridSpec(
            num_scalar_prefetch=0,
            grid=(N * num_m,),          # 1-D grid: best split across v7x's 2 TCs
            in_specs=[
                pl.BlockSpec((None, Cin, tm), lambda i: (i // num_m, 0, i % num_m)),
                pl.BlockSpec((Cout, Cin), lambda i: (0, 0)),
                pl.BlockSpec((Cout, 1), lambda i: (0, 0)),
            ],
            out_specs=pl.BlockSpec((None, Cout, tm),
                                   lambda i: (i // num_m, 0, i % num_m)),
        ),
        compiler_params=pltpu.CompilerParams(
            dimension_semantics=("parallel",),
            vmem_limit_bytes=vmem_limit,
        ),
    )(x3, w_fold, b2)

    interior = out3.reshape(N, Cout, H, W)
    if padding == 0:
        return interior

    # TODO(synk): fuse the frame fill into the tiled path as well (row-tiled
    # padded output); this branch is only reached for very large spatial maps.
    pad_vals = _act(activate, shift.astype(jnp.float32)).astype(x_nchw.dtype)
    full = jnp.broadcast_to(pad_vals.reshape(1, Cout, 1, 1), (N, Cout, Hp, Wp))
    full = full.at[:, :, padding:padding + H, padding:padding + W].set(interior)
    return full


def _reference_forward(x, conv_w, conv_b, g, b, m, v, *, padding, eps, activate):
    # Pure-JAX reference replicating the PyTorch forward (eval-mode BN).
    N, Cin, H, W = x.shape
    Cout = conv_w.shape[0]
    w2 = conv_w.reshape(Cout, Cin)
    scale = g / jnp.sqrt(v + eps)
    shift = b - m * scale
    y = jnp.einsum("oc,nchw->nohw", w2, x, precision=jax.lax.Precision.HIGHEST)
    y = y + conv_b[None, :, None, None]
    y = y * scale[None, :, None, None] + shift[None, :, None, None]
    if padding > 0:
        Hp, Wp = H + 2 * padding, W + 2 * padding
        full = jnp.broadcast_to(shift[None, :, None, None], (N, Cout, Hp, Wp))
        full = full.at[:, :, padding:padding + H, padding:padding + W].set(y)
    else:
        full = y
    return _act(activate, full)


def _run_case(key, N, Cin, Cout, H, W, padding, activate, atol):
    k = jax.random.split(key, 7)
    eps = 1e-5
    x = jax.random.normal(k[0], (N, Cin, H, W), dtype=jnp.float32)
    conv_w = jax.random.normal(k[1], (Cout, Cin, 1, 1), dtype=jnp.float32) * 0.2
    conv_b = jax.random.normal(k[2], (Cout,), dtype=jnp.float32) * 0.1
    g = 1.0 + 0.1 * jax.random.normal(k[3], (Cout,), dtype=jnp.float32)
    beta = 0.1 * jax.random.normal(k[4], (Cout,), dtype=jnp.float32)
    m = 0.1 * jax.random.normal(k[5], (Cout,), dtype=jnp.float32)
    v = jnp.abs(jax.random.normal(k[6], (Cout,), dtype=jnp.float32)) + 0.5

    out = rep_conv_pad_bn_forward(x, conv_w, conv_b, g, beta, m, v,
                                  padding=padding, eps=eps, activate=activate)
    out = jax.block_until_ready(out)
    ref = _reference_forward(x, conv_w, conv_b, g, beta, m, v,
                             padding=padding, eps=eps, activate=activate)
    assert out.shape == (N, Cout, H + 2 * padding, W + 2 * padding), out.shape
    err = float(jnp.max(jnp.abs(out - ref)))
    assert jnp.allclose(out, ref, atol=atol, rtol=atol), err


if __name__ == "__main__":
    key = jax.random.PRNGKey(0)
    k = jax.random.split(key, 4)

    # 1) Small channel counts -> VPU path, fused padded output (the module's use).
    _run_case(k[0], N=2, Cin=4, Cout=8, H=16, W=16,
              padding=1, activate="relu", atol=1e-5)

    # 2) Larger channel counts -> MXU path, fused padded output.
    _run_case(k[1], N=2, Cin=64, Cout=128, H=16, W=16,
              padding=2, activate="sigmoid", atol=5e-3)

    # 3) padding=0 -> flat tiled path, no frame.
    _run_case(k[2], N=2, Cin=32, Cout=48, H=8, W=8,
              padding=0, activate=None, atol=5e-3)

    # 4) Large spatial (H > fused-path cap) -> flat tiled path + frame fallback.
    _run_case(k[3], N=1, Cin=4, Cout=8, H=144, W=144,
              padding=1, activate="tanh", atol=1e-5)

    print("KERNEL_OK")
</pallas_src>

<mosaic_0001>
module attributes {stable_mosaic.version = 11 : i64} {
  func.func @_fused_pad_kernel(%arg0: i32, %arg1: memref<1x4x256xf32, #tpu.memory_space<vmem>>, %arg2: memref<8x4xf32, #tpu.memory_space<vmem>>, %arg3: memref<8x1xf32, #tpu.memory_space<vmem>>, %arg4: memref<8x1x1xf32, #tpu.memory_space<vmem>>, %arg5: memref<1x8x18x18xf32, #tpu.memory_space<vmem>>) attributes {dimension_semantics = [#tpu.dimension_semantics<parallel>], iteration_bounds = array<i64: 2>, scalar_prefetch = 0 : i64, scratch_operands = 0 : i64, tpu.core_type = #tpu.core_type<tc>, window_params = [{transform_indices = @transform_0, window_bounds = array<i64: 1, 4, 256>}, {pipeline_mode = #tpu.pipeline_mode<synchronous>, transform_indices = @transform_1, window_bounds = array<i64: 8, 4>}, {pipeline_mode = #tpu.pipeline_mode<synchronous>, transform_indices = @transform_2, window_bounds = array<i64: 8, 1>}, {pipeline_mode = #tpu.pipeline_mode<synchronous>, transform_indices = @transform_3, window_bounds = array<i64: 8, 1, 1>}, {transform_indices = @transform_4, window_bounds = array<i64: 1, 8, 18, 18>}]} {
    %c0 = arith.constant 0 : index
    %c0_0 = arith.constant 0 : index
    %0 = vector.load %arg2[%c0, %c0_0] : memref<8x4xf32, #tpu.memory_space<vmem>>, vector<8x4xf32>
    %c0_1 = arith.constant 0 : index
    %c0_2 = arith.constant 0 : index
    %c0_3 = arith.constant 0 : index
    %1 = vector.load %arg1[%c0_1, %c0_2, %c0_3] : memref<1x4x256xf32, #tpu.memory_space<vmem>>, vector<1x4x256xf32>
    %2 = vector.shape_cast %1 : vector<1x4x256xf32> to vector<4x256xf32>
    %c0_4 = arith.constant 0 : index
    %c0_5 = arith.constant 0 : index
    %3 = vector.load %arg3[%c0_4, %c0_5] : memref<8x1xf32, #tpu.memory_space<vmem>>, vector<8x1xf32>
    %4 = vector.shape_cast %3 : vector<8x1xf32> to vector<8x1xf32>
    %5 = vector.broadcast %4 : vector<8x1xf32> to vector<8x256xf32>
    %6 = vector.extract_strided_slice %0 {offsets = [0, 0], sizes = [8, 1], strides = [1, 1]} : vector<8x4xf32> to vector<8x1xf32>
    %7 = vector.extract_strided_slice %2 {offsets = [0, 0], sizes = [1, 256], strides = [1, 1]} : vector<4x256xf32> to vector<1x256xf32>
    %8 = vector.broadcast %6 : vector<8x1xf32> to vector<8x256xf32>
    %9 = vector.broadcast %7 : vector<1x256xf32> to vector<8x256xf32>
    %10 = arith.mulf %8, %9 : vector<8x256xf32>
    %11 = arith.addf %5, %10 : vector<8x256xf32>
    %12 = vector.extract_strided_slice %0 {offsets = [0, 1], sizes = [8, 1], strides = [1, 1]} : vector<8x4xf32> to vector<8x1xf32>
    %13 = vector.extract_strided_slice %2 {offsets = [1, 0], sizes = [1, 256], strides = [1, 1]} : vector<4x256xf32> to vector<1x256xf32>
    %14 = vector.broadcast %12 : vector<8x1xf32> to vector<8x256xf32>
    %15 = vector.broadcast %13 : vector<1x256xf32> to vector<8x256xf32>
    %16 = arith.mulf %14, %15 : vector<8x256xf32>
    %17 = arith.addf %11, %16 : vector<8x256xf32>
    %18 = vector.extract_strided_slice %0 {offsets = [0, 2], sizes = [8, 1], strides = [1, 1]} : vector<8x4xf32> to vector<8x1xf32>
    %19 = vector.extract_strided_slice %2 {offsets = [2, 0], sizes = [1, 256], strides = [1, 1]} : vector<4x256xf32> to vector<1x256xf32>
    %20 = vector.broadcast %18 : vector<8x1xf32> to vector<8x256xf32>
    %21 = vector.broadcast %19 : vector<1x256xf32> to vector<8x256xf32>
    %22 = arith.mulf %20, %21 : vector<8x256xf32>
    %23 = arith.addf %17, %22 : vector<8x256xf32>
    %24 = vector.extract_strided_slice %0 {offsets = [0, 3], sizes = [8, 1], strides = [1, 1]} : vector<8x4xf32> to vector<8x1xf32>
    %25 = vector.extract_strided_slice %2 {offsets = [3, 0], sizes = [1, 256], strides = [1, 1]} : vector<4x256xf32> to vector<1x256xf32>
    %26 = vector.broadcast %24 : vector<8x1xf32> to vector<8x256xf32>
    %27 = vector.broadcast %25 : vector<1x256xf32> to vector<8x256xf32>
    %28 = arith.mulf %26, %27 : vector<8x256xf32>
    %29 = arith.addf %23, %28 : vector<8x256xf32>
    %cst = arith.constant 0.000000e+00 : f32
    %30 = vector.broadcast %cst : f32 to vector<8x256xf32>
    %31 = arith.maximumf %29, %30 : vector<8x256xf32>
    %c0_6 = arith.constant 0 : index
    %c0_7 = arith.constant 0 : index
    %c0_8 = arith.constant 0 : index
    %32 = vector.load %arg4[%c0_6, %c0_7, %c0_8] : memref<8x1x1xf32, #tpu.memory_space<vmem>>, vector<8x1x1xf32>
    %33 = vector.shape_cast %32 : vector<8x1x1xf32> to vector<8x1x1xf32>
    %34 = vector.broadcast %33 : vector<8x1x1xf32> to vector<8x18x18xf32>
    %c0_9 = arith.constant 0 : index
    %c0_10 = arith.constant 0 : index
    %c0_11 = arith.constant 0 : index
    %c0_12 = arith.constant 0 : index
    %35 = vector.load %arg5[%c0_9, %c0_10, %c0_11, %c0_12] : memref<1x8x18x18xf32, #tpu.memory_space<vmem>>, vector<1x8x18x18xf32>
    %36 = vector.shape_cast %35 : vector<1x8x18x18xf32> to vector<8x18x18xf32>
    %37 = vector.shape_cast %34 : vector<8x18x18xf32> to vector<1x8x18x18xf32>
    tpu.vector_store %arg5[%c0_9, %c0_10, %c0_11, %c0_12], %37 {strides = array<i32>} : memref<1x8x18x18xf32, #tpu.memory_space<vmem>>, vector<1x8x18x18xf32>,
    %38 = vector.extract_strided_slice %31 {offsets = [0, 0], sizes = [8, 16], strides = [1, 1]} : vector<8x256xf32> to vector<8x16xf32>
    %39 = vector.shape_cast %38 : vector<8x16xf32> to vector<8x1x16xf32>
    %c0_13 = arith.constant 0 : index
    %c0_14 = arith.constant 0 : index
    %c1 = arith.constant 1 : index
    %c1_15 = arith.constant 1 : index
    %40 = vector.load %arg5[%c0_13, %c0_14, %c1, %c1_15] : memref<1x8x18x18xf32, #tpu.memory_space<vmem>>, vector<1x8x1x16xf32>
    %41 = vector.shape_cast %40 : vector<1x8x1x16xf32> to vector<8x1x16xf32>
    %42 = vector.shape_cast %39 : vector<8x1x16xf32> to vector<1x8x1x16xf32>
    tpu.vector_store %arg5[%c0_13, %c0_14, %c1, %c1_15], %42 {strides = array<i32>} : memref<1x8x18x18xf32, #tpu.memory_space<vmem>>, vector<1x8x1x16xf32>,
    %43 = vector.extract_strided_slice %31 {offsets = [0, 16], sizes = [8, 16], strides = [1, 1]} : vector<8x256xf32> to vector<8x16xf32>
    %44 = vector.shape_cast %43 : vector<8x16xf32> to vector<8x1x16xf32>
    %c0_16 = arith.constant 0 : index
    %c0_17 = arith.constant 0 : index
    %c2 = arith.constant 2 : index
    %c1_18 = arith.constant 1 : index
    %45 = vector.load %arg5[%c0_16, %c0_17, %c2, %c1_18] : memref<1x8x18x18xf32, #tpu.memory_space<vmem>>, vector<1x8x1x16xf32>
    %46 = vector.shape_cast %45 : vector<1x8x1x16xf32> to vector<8x1x16xf32>
    %47 = vector.shape_cast %44 : vector<8x1x16xf32> to vector<1x8x1x16xf32>
    tpu.vector_store %arg5[%c0_16, %c0_17, %c2, %c1_18], %47 {strides = array<i32>} : memref<1x8x18x18xf32, #tpu.memory_space<vmem>>, vector<1x8x1x16xf32>,
    %48 = vector.extract_strided_slice %31 {offsets = [0, 32], sizes = [8, 16], strides = [1, 1]} : vector<8x256xf32> to vector<8x16xf32>
    %49 = vector.shape_cast %48 : vector<8x16xf32> to vector<8x1x16xf32>
    %c0_19 = arith.constant 0 : index
    %c0_20 = arith.constant 0 : index
    %c3 = arith.constant 3 : index
    %c1_21 = arith.constant 1 : index
    %50 = vector.load %arg5[%c0_19, %c0_20, %c3, %c1_21] : memref<1x8x18x18xf32, #tpu.memory_space<vmem>>, vector<1x8x1x16xf32>
    %51 = vector.shape_cast %50 : vector<1x8x1x16xf32> to vector<8x1x16xf32>
    %52 = vector.shape_cast %49 : vector<8x1x16xf32> to vector<1x8x1x16xf32>
    tpu.vector_store %arg5[%c0_19, %c0_20, %c3, %c1_21], %52 {strides = array<i32>} : memref<1x8x18x18xf32, #tpu.memory_space<vmem>>, vector<1x8x1x16xf32>,
    %53 = vector.extract_strided_slice %31 {offsets = [0, 48], sizes = [8, 16], strides = [1, 1]} : vector<8x256xf32> to vector<8x16xf32>
    %54 = vector.shape_cast %53 : vector<8x16xf32> to vector<8x1x16xf32>
    %c0_22 = arith.constant 0 : index
    %c0_23 = arith.constant 0 : index
    %c4 = arith.constant 4 : index
    %c1_24 = arith.constant 1 : index
    %55 = vector.load %arg5[%c0_22, %c0_23, %c4, %c1_24] : memref<1x8x18x18xf32, #tpu.memory_space<vmem>>, vector<1x8x1x16xf32>
    %56 = vector.shape_cast %55 : vector<1x8x1x16xf32> to vector<8x1x16xf32>
    %57 = vector.shape_cast %54 : vector<8x1x16xf32> to vector<1x8x1x16xf32>
    tpu.vector_store %arg5[%c0_22, %c0_23, %c4, %c1_24], %57 {strides = array<i32>} : memref<1x8x18x18xf32, #tpu.memory_space<vmem>>, vector<1x8x1x16xf32>,
    %58 = vector.extract_strided_slice %31 {offsets = [0, 64], sizes = [8, 16], strides = [1, 1]} : vector<8x256xf32> to vector<8x16xf32>
    %59 = vector.shape_cast %58 : vector<8x16xf32> to vector<8x1x16xf32>
    %c0_25 = arith.constant 0 : index
    %c0_26 = arith.constant 0 : index
    %c5 = arith.constant 5 : index
    %c1_27 = arith.constant 1 : index
    %60 = vector.load %arg5[%c0_25, %c0_26, %c5, %c1_27] : memref<1x8x18x18xf32, #tpu.memory_space<vmem>>, vector<1x8x1x16xf32>
    %61 = vector.shape_cast %60 : vector<1x8x1x16xf32> to vector<8x1x16xf32>
    %62 = vector.shape_cast %59 : vector<8x1x16xf32> to vector<1x8x1x16xf32>
    tpu.vector_store %arg5[%c0_25, %c0_26, %c5, %c1_27], %62 {strides = array<i32>} : memref<1x8x18x18xf32, #tpu.memory_space<vmem>>, vector<1x8x1x16xf32>,
    %63 = vector.extract_strided_slice %31 {offsets = [0, 80], sizes = [8, 16], strides = [1, 1]} : vector<8x256xf32> to vector<8x16xf32>
    %64 = vector.shape_cast %63 : vector<8x16xf32> to vector<8x1x16xf32>
    %c0_28 = arith.constant 0 : index
    %c0_29 = arith.constant 0 : index
    %c6 = arith.constant 6 : index
    %c1_30 = arith.constant 1 : index
    %65 = vector.load %arg5[%c0_28, %c0_29, %c6, %c1_30] : memref<1x8x18x18xf32, #tpu.memory_space<vmem>>, vector<1x8x1x16xf32>
    %66 = vector.shape_cast %65 : vector<1x8x1x16xf32> to vector<8x1x16xf32>
    %67 = vector.shape_cast %64 : vector<8x1x16xf32> to vector<1x8x1x16xf32>
    tpu.vector_store %arg5[%c0_28, %c0_29, %c6, %c1_30], %67 {strides = array<i32>} : memref<1x8x18x18xf32, #tpu.memory_space<vmem>>, vector<1x8x1x16xf32>,
    %68 = vector.extract_strided_slice %31 {offsets = [0, 96], sizes = [8, 16], strides = [1, 1]} : vector<8x256xf32> to vector<8x16xf32>
    %69 = vector.shape_cast %68 : vector<8x16xf32> to vector<8x1x16xf32>
    %c0_31 = arith.constant 0 : index
    %c0_32 = arith.constant 0 : index
    %c7 = arith.constant 7 : index
    %c1_33 = arith.constant 1 : index
    %70 = vector.load %arg5[%c0_31, %c0_32, %c7, %c1_33] : memref<1x8x18x18xf32, #tpu.memory_space<vmem>>, vector<1x8x1x16xf32>
    %71 = vector.shape_cast %70 : vector<1x8x1x16xf32> to vector<8x1x16xf32>
    %72 = vector.shape_cast %69 : vector<8x1x16xf32> to vector<1x8x1x16xf32>
    tpu.vector_store %arg5[%c0_31, %c0_32, %c7, %c1_33], %72 {strides = array<i32>} : memref<1x8x18x18xf32, #tpu.memory_space<vmem>>, vector<1x8x1x16xf32>,
    %73 = vector.extract_strided_slice %31 {offsets = [0, 112], sizes = [8, 16], strides = [1, 1]} : vector<8x256xf32> to vector<8x16xf32>
    %74 = vector.shape_cast %73 : vector<8x16xf32> to vector<8x1x16xf32>
    %c0_34 = arith.constant 0 : index
    %c0_35 = arith.constant 0 : index
    %c8 = arith.constant 8 : index
    %c1_36 = arith.constant 1 : index
    %75 = vector.load %arg5[%c0_34, %c0_35, %c8, %c1_36] : memref<1x8x18x18xf32, #tpu.memory_space<vmem>>, vector<1x8x1x16xf32>
    %76 = vector.shape_cast %75 : vector<1x8x1x16xf32> to vector<8x1x16xf32>
    %77 = vector.shape_cast %74 : vector<8x1x16xf32> to vector<1x8x1x16xf32>
    tpu.vector_store %arg5[%c0_34, %c0_35, %c8, %c1_36], %77 {strides = array<i32>} : memref<1x8x18x18xf32, #tpu.memory_space<vmem>>, vector<1x8x1x16xf32>,
    %78 = vector.extract_strided_slice %31 {offsets = [0, 128], sizes = [8, 16], strides = [1, 1]} : vector<8x256xf32> to vector<8x16xf32>
    %79 = vector.shape_cast %78 : vector<8x16xf32> to vector<8x1x16xf32>
    %c0_37 = arith.constant 0 : index
    %c0_38 = arith.constant 0 : index
    %c9 = arith.constant 9 : index
    %c1_39 = arith.constant 1 : index
    %80 = vector.load %arg5[%c0_37, %c0_38, %c9, %c1_39] : memref<1x8x18x18xf32, #tpu.memory_space<vmem>>, vector<1x8x1x16xf32>
    %81 = vector.shape_cast %80 : vector<1x8x1x16xf32> to vector<8x1x16xf32>
    %82 = vector.shape_cast %79 : vector<8x1x16xf32> to vector<1x8x1x16xf32>
    tpu.vector_store %arg5[%c0_37, %c0_38, %c9, %c1_39], %82 {strides = array<i32>} : memref<1x8x18x18xf32, #tpu.memory_space<vmem>>, vector<1x8x1x16xf32>,
    %83 = vector.extract_strided_slice %31 {offsets = [0, 144], sizes = [8, 16], strides = [1, 1]} : vector<8x256xf32> to vector<8x16xf32>
    %84 = vector.shape_cast %83 : vector<8x16xf32> to vector<8x1x16xf32>
    %c0_40 = arith.constant 0 : index
    %c0_41 = arith.constant 0 : index
    %c10 = arith.constant 10 : index
    %c1_42 = arith.constant 1 : index
    %85 = vector.load %arg5[%c0_40, %c0_41, %c10, %c1_42] : memref<1x8x18x18xf32, #tpu.memory_space<vmem>>, vector<1x8x1x16xf32>
    %86 = vector.shape_cast %85 : vector<1x8x1x16xf32> to vector<8x1x16xf32>
    %87 = vector.shape_cast %84 : vector<8x1x16xf32> to vector<1x8x1x16xf32>
    tpu.vector_store %arg5[%c0_40, %c0_41, %c10, %c1_42], %87 {strides = array<i32>} : memref<1x8x18x18xf32, #tpu.memory_space<vmem>>, vector<1x8x1x16xf32>,
    %88 = vector.extract_strided_slice %31 {offsets = [0, 160], sizes = [8, 16], strides = [1, 1]} : vector<8x256xf32> to vector<8x16xf32>
    %89 = vector.shape_cast %88 : vector<8x16xf32> to vector<8x1x16xf32>
    %c0_43 = arith.constant 0 : index
    %c0_44 = arith.constant 0 : index
    %c11 = arith.constant 11 : index
    %c1_45 = arith.constant 1 : index
    %90 = vector.load %arg5[%c0_43, %c0_44, %c11, %c1_45] : memref<1x8x18x18xf32, #tpu.memory_space<vmem>>, vector<1x8x1x16xf32>
    %91 = vector.shape_cast %90 : vector<1x8x1x16xf32> to vector<8x1x16xf32>
    %92 = vector.shape_cast %89 : vector<8x1x16xf32> to vector<1x8x1x16xf32>
    tpu.vector_store %arg5[%c0_43, %c0_44, %c11, %c1_45], %92 {strides = array<i32>} : memref<1x8x18x18xf32, #tpu.memory_space<vmem>>, vector<1x8x1x16xf32>,
    %93 = vector.extract_strided_slice %31 {offsets = [0, 176], sizes = [8, 16], strides = [1, 1]} : vector<8x256xf32> to vector<8x16xf32>
    %94 = vector.shape_cast %93 : vector<8x16xf32> to vector<8x1x16xf32>
    %c0_46 = arith.constant 0 : index
    %c0_47 = arith.constant 0 : index
    %c12 = arith.constant 12 : index
    %c1_48 = arith.constant 1 : index
    %95 = vector.load %arg5[%c0_46, %c0_47, %c12, %c1_48] : memref<1x8x18x18xf32, #tpu.memory_space<vmem>>, vector<1x8x1x16xf32>
    %96 = vector.shape_cast %95 : vector<1x8x1x16xf32> to vector<8x1x16xf32>
    %97 = vector.shape_cast %94 : vector<8x1x16xf32> to vector<1x8x1x16xf32>
    tpu.vector_store %arg5[%c0_46, %c0_47, %c12, %c1_48], %97 {strides = array<i32>} : memref<1x8x18x18xf32, #tpu.memory_space<vmem>>, vector<1x8x1x16xf32>,
    %98 = vector.extract_strided_slice %31 {offsets = [0, 192], sizes = [8, 16], strides = [1, 1]} : vector<8x256xf32> to vector<8x16xf32>
    %99 = vector.shape_cast %98 : vector<8x16xf32> to vector<8x1x16xf32>
    %c0_49 = arith.constant 0 : index
    %c0_50 = arith.constant 0 : index
    %c13 = arith.constant 13 : index
    %c1_51 = arith.constant 1 : index
    %100 = vector.load %arg5[%c0_49, %c0_50, %c13, %c1_51] : memref<1x8x18x18xf32, #tpu.memory_space<vmem>>, vector<1x8x1x16xf32>
    %101 = vector.shape_cast %100 : vector<1x8x1x16xf32> to vector<8x1x16xf32>
    %102 = vector.shape_cast %99 : vector<8x1x16xf32> to vector<1x8x1x16xf32>
    tpu.vector_store %arg5[%c0_49, %c0_50, %c13, %c1_51], %102 {strides = array<i32>} : memref<1x8x18x18xf32, #tpu.memory_space<vmem>>, vector<1x8x1x16xf32>,
    %103 = vector.extract_strided_slice %31 {offsets = [0, 208], sizes = [8, 16], strides = [1, 1]} : vector<8x256xf32> to vector<8x16xf32>
    %104 = vector.shape_cast %103 : vector<8x16xf32> to vector<8x1x16xf32>
    %c0_52 = arith.constant 0 : index
    %c0_53 = arith.constant 0 : index
    %c14 = arith.constant 14 : index
    %c1_54 = arith.constant 1 : index
    %105 = vector.load %arg5[%c0_52, %c0_53, %c14, %c1_54] : memref<1x8x18x18xf32, #tpu.memory_space<vmem>>, vector<1x8x1x16xf32>
    %106 = vector.shape_cast %105 : vector<1x8x1x16xf32> to vector<8x1x16xf32>
    %107 = vector.shape_cast %104 : vector<8x1x16xf32> to vector<1x8x1x16xf32>
    tpu.vector_store %arg5[%c0_52, %c0_53, %c14, %c1_54], %107 {strides = array<i32>} : memref<1x8x18x18xf32, #tpu.memory_space<vmem>>, vector<1x8x1x16xf32>,
    %108 = vector.extract_strided_slice %31 {offsets = [0, 224], sizes = [8, 16], strides = [1, 1]} : vector<8x256xf32> to vector<8x16xf32>
    %109 = vector.shape_cast %108 : vector<8x16xf32> to vector<8x1x16xf32>
    %c0_55 = arith.constant 0 : index
    %c0_56 = arith.constant 0 : index
    %c15 = arith.constant 15 : index
    %c1_57 = arith.constant 1 : index
    %110 = vector.load %arg5[%c0_55, %c0_56, %c15, %c1_57] : memref<1x8x18x18xf32, #tpu.memory_space<vmem>>, vector<1x8x1x16xf32>
    %111 = vector.shape_cast %110 : vector<1x8x1x16xf32> to vector<8x1x16xf32>
    %112 = vector.shape_cast %109 : vector<8x1x16xf32> to vector<1x8x1x16xf32>
    tpu.vector_store %arg5[%c0_55, %c0_56, %c15, %c1_57], %112 {strides = array<i32>} : memref<1x8x18x18xf32, #tpu.memory_space<vmem>>, vector<1x8x1x16xf32>,
    %113 = vector.extract_strided_slice %31 {offsets = [0, 240], sizes = [8, 16], strides = [1, 1]} : vector<8x256xf32> to vector<8x16xf32>
    %114 = vector.shape_cast %113 : vector<8x16xf32> to vector<8x1x16xf32>
    %c0_58 = arith.constant 0 : index
    %c0_59 = arith.constant 0 : index
    %c16 = arith.constant 16 : index
    %c1_60 = arith.constant 1 : index
    %115 = vector.load %arg5[%c0_58, %c0_59, %c16, %c1_60] : memref<1x8x18x18xf32, #tpu.memory_space<vmem>>, vector<1x8x1x16xf32>
    %116 = vector.shape_cast %115 : vector<1x8x1x16xf32> to vector<8x1x16xf32>
    %117 = vector.shape_cast %114 : vector<8x1x16xf32> to vector<1x8x1x16xf32>
    tpu.vector_store %arg5[%c0_58, %c0_59, %c16, %c1_60], %117 {strides = array<i32>} : memref<1x8x18x18xf32, #tpu.memory_space<vmem>>, vector<1x8x1x16xf32>,
    return
  }
  func.func @transform_0(%arg0: i32) -> (i32, i32, i32) {
    %c0_i32 = arith.constant 0 : i32
    %c0_i32_0 = arith.constant 0 : i32
    %c0_i32_1 = arith.constant 0 : i32
    return %arg0, %c0_i32, %c0_i32_0 : i32, i32, i32
  }
  func.func @transform_1(%arg0: i32) -> (i32, i32) {
    %c0_i32 = arith.constant 0 : i32
    %c0_i32_0 = arith.constant 0 : i32
    %c0_i32_1 = arith.constant 0 : i32
    return %c0_i32, %c0_i32_0 : i32, i32
  }
  func.func @transform_2(%arg0: i32) -> (i32, i32) {
    %c0_i32 = arith.constant 0 : i32
    %c0_i32_0 = arith.constant 0 : i32
    %c0_i32_1 = arith.constant 0 : i32
    return %c0_i32, %c0_i32_0 : i32, i32
  }
  func.func @transform_3(%arg0: i32) -> (i32, i32, i32) {
    %c0_i32 = arith.constant 0 : i32
    %c0_i32_0 = arith.constant 0 : i32
    %c0_i32_1 = arith.constant 0 : i32
    %c0_i32_2 = arith.constant 0 : i32
    return %c0_i32, %c0_i32_0, %c0_i32_1 : i32, i32, i32
  }
  func.func @transform_4(%arg0: i32) -> (i32, i32, i32, i32) {
    %c0_i32 = arith.constant 0 : i32
    %c0_i32_0 = arith.constant 0 : i32
    %c0_i32_1 = arith.constant 0 : i32
    %c0_i32_2 = arith.constant 0 : i32
    return %arg0, %c0_i32, %c0_i32_0, %c0_i32_1 : i32, i32, i32, i32
  }
}

</mosaic_0001>

<bundles_post_ra>
// kernel: tpu_custom_call.1
= control target key start
LH: loop header
LB: loop body
LE: loop exit
PB: predicated region body
PF: predicated region fallthrough
CT: control target
= control target key end

     0   :  { %s1244_s15 = smov 0   ;;  %s1886_s0 = inlined_call_operand.vmem [shape: f32[2,4,256], index: 0, kind: input, shape index: {}]   ;;  %s1887_s1 = inlined_call_operand.vmem [shape: f32[8,4], index: 1, kind: input, shape index: {}]   ;;  %s1888_s2 = inlined_call_operand.vmem [shape: f32[8,1], index: 2, kind: input, shape index: {}]   ;;  %s1889_s3 = inlined_call_operand.vmem [shape: f32[8,1,1], index: 3, kind: input, shape index: {}]   ;;  %s1890_s4 = inlined_call_operand.vmem [shape: f32[2,8,18,18], index: 4, kind: output, shape index: {}]  }
   0x1 LB: > { %s1152_s16 = sadd.s32 4294967295, %s1204_s15   ;;  %p1156_p0 = scmp.ge.s32.totalorder %s1204_s15, 1  ;;  %s1204_s15 = sphi %s1244_s15, %s14_s15  }
   0x2   : > { %p162_p1 = scmp.lt.s32.totalorder %s1204_s15, 3 }
   0x4   : > { %p163_p2 = pnand %p1156_p0, %p162_p1 }
   0x5   : > { %v198_v0 = vld [vmem:[%s1887_s1] sm:$0xff] (!%p163_p2)  ;;  %v1206_v1 = vmov (!%p163_p2), 3   ;;  %v1207_v2 = vmov (!%p163_p2), 1   ;;  %v212_v3 = vlaneseq (!%p163_p2)  ;;  %p188_p3 = scmp.lt.s32.totalorder (!%p163_p2), %s1152_s16, 1  ;;  %v1208_v6 = vmov (!%p163_p2), 0   ;;  %s1213_s22 = smov (!%p163_p2), 97  }
   0x6   : > { %166 = sbr.rel (%p163_p2) target bundleno = 532 (0x214), region = 36  ;;  %1195 = vset.pattern.permute.xlu0 (!%p163_p2), %v1206_v1  ;;  %1193 = vset.pattern.permute.xlu1 (!%p163_p2), %v1207_v2  ;;  %v200_v5 = vld [vmem:[%s1888_s2] sm:$0xff] (!%p163_p2)  ;;  %v1209_v7 = vmov (!%p163_p2), 2   ;;  %vm394_vm0 = vcmask (!%p163_p2), 146432   ;;  %vm397_vm1 = vcmask (!%p163_p2), 140288   ;;  %s1214_s23 = smov (!%p163_p2), 81  }
   0x7   : > { %287 = vperm.xlu0 (!%p163_p2), %1195, %v198_v0   ;;  %235 = vperm.xlu1 (!%p163_p2), %1193, %v198_v0   ;;  %v1255_v4 = vshrl.u32 (!%p163_p2), %v212_v3, 7  ;;  %v1160_v11 = vld [vmem:[%s1889_s3] ss:$0 sm:$0xff] (!%p163_p2)  ;;  %v1162_v19 = vld [vmem:[%s1889_s3 + $0x2] ss:$0 sm:$0xff] (!%p163_p2)  ;;  %s1216_s25 = smov (!%p163_p2), 49  }
   0x8   : > { %v1161_v22 = vld [vmem:[%s1889_s3 + $0x1] ss:$0 sm:$0xff] (!%p163_p2)  ;;  %v1165_v25 = vld [vmem:[%s1889_s3 + $0x5] ss:$0 sm:$0xff] (!%p163_p2)  ;;  %v1163_v27 = vld [vmem:[%s1889_s3 + $0x3] ss:$0 sm:$0xff] (!%p163_p2) }
   0x9   : > { %v296_v8 = vsub.s32 (!%p163_p2), 7, %v1255_v4  ;;  %v244_v9 = vsub.s32 (!%p163_p2), 5, %v1255_v4  ;;  %v218_v10 = vsub.s32 (!%p163_p2), 4, %v1255_v4  ;;  %v1273_v12 = vsub.s32 (!%p163_p2), 3, %v1255_v4  ;;  %v1167_v28 = vld [vmem:[%s1889_s3 + $0x7] ss:$0 sm:$0xff] (!%p163_p2) }
   0xa   : > { %v240_v15 = vsub.s32 (!%p163_p2), 1, %v1255_v4  ;;  %v270_v17 = vsub.s32 (!%p163_p2), 6, %v1255_v4  ;;  %v266_v23 = vsub.s32 (!%p163_p2), 2, %v1255_v4  ;;  %v1164_v29 = vld [vmem:[%s1889_s3 + $0x4] ss:$0 sm:$0xff] (!%p163_p2)  ;;  %v1304_v31 = vsub.s32 (!%p163_p2), 0, %v1255_v4 }
   0xb   : > { %1196 = vset.pattern.permute.xlu0 (!%p163_p2), %v1208_v6  ;;  %1194 = vset.pattern.permute.xlu1 (!%p163_p2), %v1209_v7  ;;  %v1166_v30 = vld [vmem:[%s1889_s3 + $0x6] ss:$0 sm:$0xff] (!%p163_p2)  ;;  %v1210_v47 = vmov (!%p163_p2), 1966171168   ;;  %s1217_s26 = smov (!%p163_p2), 33   ;;  %s1218_s27 = smov (!%p163_p2), 17  }
   0xc   : > { %203 = vperm.xlu0 (!%p163_p2), %1196, %v200_v5   ;;  %261 = vperm.xlu1 (!%p163_p2), %1194, %v198_v0   ;;  %v423_v48 = vunpack.c.l.s4 (!%p163_p2), %v1210_v47  ;;  %vm526_vm2 = vcmask (!%p163_p2), 131080  }
   0xd   : > { %s1892_s16 = smov (!%p188_p3, %s1152_s16), 1 }
   0xe   : > { %s1170_s21 = sshll.u32 %s1892_s16, 3  ;;  %s1171_s17 = smul.u32 192, %s1892_s16  ;;  %v424_v58 = vunpack.c.0.s8 %v423_v48 }
   0xf   : > { %s192_s24 = scalar_lea.vmem %s1886_s0, %s1170_s21  ;;  %s1211_s16 = smov 1  }
  0x10   : > { %v199_v13 = vld [vmem:[%s192_s24] sm:$0xff]  ;;  %208 = vperm.xlu0 %1196, %v198_v0   ;;  %1197 = vset.pattern.permute.xlu1 %v1208_v6  ;;  %s1314_s20 = scalar_lea.vmem %s1890_s4, %s1171_s17  ;;  %v1339_v3 = vsub.s32 %v424_v58, %v1255_v4  ;;  %s1212_s21 = smov 113  }
  0x11   : > { %v1275_v14 = vrot.slane %v199_v13, %v296_v8  ;;  %v245_v16 = vrot.slane %v199_v13, %v244_v9  ;;  %v219_v18 = vrot.slane %v199_v13, %v218_v10  ;;  %363 = vperm.xlu1 %1197, %v1160_v11   ;;  %v271_v24 = vrot.slane %v199_v13, %v270_v17  ;;  %s1215_s24 = smov 65  }
  0x12   : > { %v215_v34 = vrot.slane %v199_v13, %v1304_v31  ;;  %v241_v35 = vrot.slane %v199_v13, %v240_v15  ;;  %v267_v36 = vrot.slane %v199_v13, %v266_v23  ;;  %v293_v41 = vrot.slane %v199_v13, %v1273_v12 }
  0x13   : > { %v307_v20 = vrot.slane %v1275_v14, %v1273_v12  ;;  %v255_v21 = vrot.slane %v245_v16, %v240_v15  ;;  %v281_v26 = vrot.slane %v271_v24, %v266_v23  ;;  %v229_v39 = vrot.slane %v219_v18, %v1304_v31 }
  0x14   : > { %371 = vperm.xlu0 %1196, %v1162_v19   ;;  %v225_v38 = vrot.slane %v215_v34, %v1304_v31  ;;  %v251_v42 = vrot.slane %v241_v35, %v240_v15  ;;  %v277_v43 = vrot.slane %v267_v36, %v266_v23  ;;  %v303_v50 = vrot.slane %v293_v41, %v1273_v12 }
  0x15   : > { %367 = vperm.xlu1 %1197, %v1161_v22  }
  0x18   : > { %383 = vperm.xlu0 %1196, %v1165_v25  }
  0x19   : > { %375 = vperm.xlu1 %1197, %v1163_v27  }
  0x1c   : > { %391 = vperm.xlu0 %1196, %v1167_v28  }
  0x1d   : > { %379 = vperm.xlu1 %1197, %v1164_v29  }
  0x21   : > { %387 = vperm.xlu1 %1197, %v1166_v30  }
  0x86   : > { %v288_v32 = vpop.permute.xlu0 %287  ;;  %v236_v33 = vpop.permute.xlu1 %235 }
  0x87   : > { %v256_v51 = vmul.f32 %v251_v42, %v236_v33  ;;  %v257_v52 = vmul.f32 %v255_v21, %v236_v33  ;;  %v308_v62 = vmul.f32 %v303_v50, %v288_v32  ;;  %v309_v63 = vmul.f32 %v307_v20, %v288_v32 }
  0x8b   : > { %v204_v37 = vpop.permute.xlu0 %203  ;;  %v262_v40 = vpop.permute.xlu1 %261 }
  0x8c   : > { %v282_v55 = vmul.f32 %v277_v43, %v262_v40  ;;  %v283_v56 = vmul.f32 %v281_v26, %v262_v40 }
  0x8f   : > { %v209_v44 = vpop.permute.xlu0 %208 }
  0x90   : > { %v230_v45 = vmul.f32 %v225_v38, %v209_v44  ;;  %v231_v46 = vmul.f32 %v229_v39, %v209_v44  ;;  %v364_v49 = vpop.permute.xlu1 %363 }
  0x91   : > { %395 = vst.msk [vmem:[%s1314_s20] sm:$0xff] %vm394_vm0, %v364_v49  ;;  %396 = vst.msk [vmem:[%s1314_s20 + $0x8] sm:$0xff] %vm394_vm0, %v364_v49 }
  0x92   : > { %398 = vst.msk [vmem:[%s1314_s20 + $0x10] sm:$0x3] %vm397_vm1, %v364_v49  ;;  %v232_v53 = vadd.f32 %v230_v45, %v204_v37  ;;  %v233_v54 = vadd.f32 %v231_v46, %v204_v37 }
  0x93   : > { %v372_v57 = vpop.permute.xlu0 %371 }
  0x94   : > { %402 = vst.msk [vmem:[%s1314_s20 + $0x30] sm:$0xff] %vm394_vm0, %v372_v57  ;;  %403 = vst.msk [vmem:[%s1314_s20 + $0x38] sm:$0xff] %vm394_vm0, %v372_v57  ;;  %v258_v59 = vadd.f32 %v256_v51, %v232_v53  ;;  %v259_v60 = vadd.f32 %v257_v52, %v233_v54  ;;  %v368_v61 = vpop.permute.xlu1 %367 }
  0x95   : > { %404 = vst.msk [vmem:[%s1314_s20 + $0x40] sm:$0x3] %vm397_vm1, %v372_v57  ;;  %401 = vst.msk [vmem:[%s1314_s20 + $0x28] sm:$0x3] %vm397_vm1, %v368_v61 }
  0x96   : > { %399 = vst.msk [vmem:[%s1314_s20 + $0x18] sm:$0xff] %vm394_vm0, %v368_v61  ;;  %400 = vst.msk [vmem:[%s1314_s20 + $0x20] sm:$0xff] %vm394_vm0, %v368_v61  ;;  %v284_v0 = vadd.f32 %v282_v55, %v258_v59  ;;  %v285_v1 = vadd.f32 %v283_v56, %v259_v60 }
  0x97   : > { %v384_v2 = vpop.permute.xlu0 %383 }
  0x98   : > { %v310_v5 = vadd.f32 %v308_v62, %v284_v0  ;;  %v311_v6 = vadd.f32 %v309_v63, %v285_v1  ;;  %411 = vst.msk [vmem:[%s1314_s20 + $0x78] sm:$0xff] %vm394_vm0, %v384_v2  ;;  %412 = vst.msk [vmem:[%s1314_s20 + $0x80] sm:$0xff] %vm394_vm0, %v384_v2  ;;  %v376_v7 = vpop.permute.xlu1 %375 }
  0x99   : > { %413 = vst.msk [vmem:[%s1314_s20 + $0x88] sm:$0x3] %vm397_vm1, %v384_v2  ;;  %407 = vst.msk [vmem:[%s1314_s20 + $0x58] sm:$0x3] %vm397_vm1, %v376_v7 }
  0x9a   : > { %405 = vst.msk [vmem:[%s1314_s20 + $0x48] sm:$0xff] %vm394_vm0, %v376_v7  ;;  %406 = vst.msk [vmem:[%s1314_s20 + $0x50] sm:$0xff] %vm394_vm0, %v376_v7  ;;  %v312_v4 = vmax.f32 %v310_v5, 0.0  ;;  %v313_v8 = vmax.f32 %v311_v6, 0.0 }
  0x9b   : > { %v392_v9 = vpop.permute.xlu0 %391 }
  0x9c   : > { %v428_v10 = vrot.slane %v312_v4, %v1339_v3  ;;  %v760_v11 = vcombine.high %v313_v8, %v313_v8  ;;  %v767_v12 = vrot.slane %v313_v8, %v1339_v3  ;;  %417 = vst.msk [vmem:[%s1314_s20 + $0xa8] sm:$0xff] %vm394_vm0, %v392_v9  ;;  %418 = vst.msk [vmem:[%s1314_s20 + $0xb0] sm:$0xff] %vm394_vm0, %v392_v9  ;;  %v380_v13 = vpop.permute.xlu1 %379 }
  0x9d   : > { %419 = vst.msk [vmem:[%s1314_s20 + $0xb8] sm:$0x3] %vm397_vm1, %v392_v9  ;;  %410 = vst.msk [vmem:[%s1314_s20 + $0x70] sm:$0x3] %vm397_vm1, %v380_v13  ;;  %v421_v27 = vcombine.high %v312_v4, %v312_v4 }
  0x9e   : > { %408 = vst.msk [vmem:[%s1314_s20 + $0x60] sm:$0xff] %vm394_vm0, %v380_v13  ;;  %409 = vst.msk [vmem:[%s1314_s20 + $0x68] sm:$0xff] %vm394_vm0, %v380_v13  ;;  %v436_v14 = vcombine.high %v428_v10, %v428_v10  ;;  %v444_v15 = vrot.slane %v428_v10, %v1339_v3  ;;  %v774_v16 = vrot.slane %v760_v11, %v1339_v3 }
  0x9f   : > { %v775_v17 = vcombine.high %v767_v12, %v767_v12  ;;  %v1370_v18 = vrot.slane %v767_v12, %v1339_v3  ;;  %v435_v28 = vrot.slane %v421_v27, %v1339_v3 }
  0xa0   : > { %v458_v19 = vrot.slane %v436_v14, %v1339_v3  ;;  %v388_v20 = vpop.permute.xlu1 %387  ;;  %v473_v21 = vrot.slane %v444_v15, %v1304_v31  ;;  %v776_v22 = vcombine.high %v774_v16, %v774_v16  ;;  %v1375_v23 = vrot.slane %v774_v16, %v1339_v3 }
  0xa1   : > { %v1378_v24 = vrot.slane %v775_v17, %v1339_v3  ;;  %414 = vst.msk [vmem:[%s1314_s20 + $0x90] sm:$0xff] %vm394_vm0, %v388_v20  ;;  %415 = vst.msk [vmem:[%s1314_s20 + $0x98] sm:$0xff] %vm394_vm0, %v388_v20  ;;  %v466_v29 = vcombine.high %v444_v15, %v444_v15  ;;  %v437_v30 = vcombine.high %v435_v28, %v435_v28 }
  0xa2   : > { %416 = vst.msk [vmem:[%s1314_s20 + $0xa0] sm:$0x3] %vm397_vm1, %v388_v20  ;;  %v477_v25 = vrot.slane %v458_v19, %v1304_v31  ;;  %v1388_v26 = vrot.slane %v776_v22, %v1339_v3  ;;  %502 = vrot.lane.b32.xlu1 %v473_v21, %s1211_s16  ;;  %v468_v32 = vcombine.high %v458_v19, %v458_v19 }
  0xa3   : > { %v451_v33 = vrot.slane %v435_v28, %v1339_v3  ;;  %v481_v34 = vrot.slane %v466_v29, %v1304_v31  ;;  %v465_v35 = vrot.slane %v437_v30, %v1339_v3  ;;  %v805_v49 = vcombine.high %v1370_v18, %v1370_v18 }
  0xa4   : > { %504 = vrot.lane.b32.xlu0 %v477_v25, %s1211_s16  ;;  %v485_v36 = vrot.slane %v468_v32, %v1304_v31  ;;  %v1479_v50 = vrot.slane %v1370_v18, %v1304_v31  ;;  %v807_v52 = vcombine.high %v1378_v24, %v1378_v24  ;;  %v1485_v53 = vrot.slane %v1378_v24, %v1304_v31 }
  0xa5   : > { %v489_v37 = vrot.slane %v451_v33, %v1304_v31  ;;  %v493_v38 = vrot.slane %v465_v35, %v1304_v31  ;;  %v467_v39 = vcombine.high %v451_v33, %v451_v33  ;;  %v469_v40 = vcombine.high %v465_v35, %v465_v35 }
  0xa6   : > { %535 = vrot.lane.b32.xlu1 %v473_v21, %s1212_s21  ;;  %v1496_v55 = vrot.slane %v805_v49, %v1304_v31  ;;  %v1499_v57 = vrot.slane %v807_v52, %v1304_v31  ;;  %v806_v59 = vcombine.high %v1375_v23, %v1375_v23  ;;  %v1513_v60 = vrot.slane %v1375_v23, %v1304_v31 }
  0xa7   : > { %v497_v41 = vrot.slane %v467_v39, %v1304_v31  ;;  %v501_v42 = vrot.slane %v469_v40, %v1304_v31  ;;  %v808_v62 = vcombine.high %v1388_v26, %v1388_v26  ;;  %v1519_v63 = vrot.slane %v1388_v26, %v1304_v31 }
  0xa8   : > { %537 = vrot.lane.b32.xlu0 %v477_v25, %s1212_s21  ;;  %v1530_v1 = vrot.slane %v806_v59, %v1304_v31 }
  0xa9   : > { %v1533_v3 = vrot.slane %v808_v62, %v1304_v31 }
  0xaa   : > { %567 = vrot.lane.b32.xlu1 %v473_v21, %s1213_s22 }
  0xac   : > { %569 = vrot.lane.b32.xlu0 %v477_v25, %s1213_s22 }
  0xae   : > { %599 = vrot.lane.b32.xlu1 %v473_v21, %s1214_s23 }
  0xb0   : > { %601 = vrot.lane.b32.xlu0 %v477_v25, %s1214_s23 }
  0xb2   : > { %631 = vrot.lane.b32.xlu1 %v473_v21, %s1215_s24 }
  0xb4   : > { %633 = vrot.lane.b32.xlu0 %v477_v25, %s1215_s24 }
  0xb6   : > { %663 = vrot.lane.b32.xlu1 %v473_v21, %s1216_s25 }
  0xb8   : > { %665 = vrot.lane.b32.xlu0 %v477_v25, %s1216_s25 }
  0xba   : > { %695 = vrot.lane.b32.xlu1 %v473_v21, %s1217_s26 }
  0xbc   : > { %697 = vrot.lane.b32.xlu0 %v477_v25, %s1217_s26 }
  0xbe   : > { %727 = vrot.lane.b32.xlu1 %v473_v21, %s1218_s27 }
  0xc0   : > { %729 = vrot.lane.b32.xlu0 %v477_v25, %s1218_s27 }
  0xc2   : > { %506 = vrot.lane.b32.xlu1 %v481_v34, %s1211_s16 }
  0xc4   : > { %508 = vrot.lane.b32.xlu0 %v485_v36, %s1211_s16 }
  0xc6   : > { %510 = vrot.lane.b32.xlu1 %v489_v37, %s1211_s16 }
  0xc8   : > { %512 = vrot.lane.b32.xlu0 %v493_v38, %s1211_s16 }
  0xca   : > { %539 = vrot.lane.b32.xlu1 %v481_v34, %s1212_s21 }
  0xcc   : > { %541 = vrot.lane.b32.xlu0 %v485_v36, %s1212_s21 }
  0xce   : > { %543 = vrot.lane.b32.xlu1 %v489_v37, %s1212_s21 }
  0xd0   : > { %545 = vrot.lane.b32.xlu0 %v493_v38, %s1212_s21 }
  0xd2   : > { %571 = vrot.lane.b32.xlu1 %v481_v34, %s1213_s22 }
  0xd4   : > { %573 = vrot.lane.b32.xlu0 %v485_v36, %s1213_s22 }
  0xd6   : > { %575 = vrot.lane.b32.xlu1 %v489_v37, %s1213_s22 }
  0xd8   : > { %577 = vrot.lane.b32.xlu0 %v493_v38, %s1213_s22 }
  0xda   : > { %603 = vrot.lane.b32.xlu1 %v481_v34, %s1214_s23 }
  0xdc   : > { %605 = vrot.lane.b32.xlu0 %v485_v36, %s1214_s23 }
  0xde   : > { %607 = vrot.lane.b32.xlu1 %v489_v37, %s1214_s23 }
  0xe0   : > { %609 = vrot.lane.b32.xlu0 %v493_v38, %s1214_s23 }
  0xe2   : > { %635 = vrot.lane.b32.xlu1 %v481_v34, %s1215_s24 }
  0xe4   : > { %637 = vrot.lane.b32.xlu0 %v485_v36, %s1215_s24 }
  0xe6   : > { %639 = vrot.lane.b32.xlu1 %v489_v37, %s1215_s24 }
  0xe8   : > { %641 = vrot.lane.b32.xlu0 %v493_v38, %s1215_s24 }
  0xea   : > { %667 = vrot.lane.b32.xlu1 %v481_v34, %s1216_s25 }
  0xec   : > { %669 = vrot.lane.b32.xlu0 %v485_v36, %s1216_s25 }
  0xee   : > { %671 = vrot.lane.b32.xlu1 %v489_v37, %s1216_s25 }
  0xf0   : > { %673 = vrot.lane.b32.xlu0 %v493_v38, %s1216_s25 }
  0xf2   : > { %699 = vrot.lane.b32.xlu1 %v481_v34, %s1217_s26 }
  0xf4   : > { %701 = vrot.lane.b32.xlu0 %v485_v36, %s1217_s26 }
  0xf6   : > { %703 = vrot.lane.b32.xlu1 %v489_v37, %s1217_s26 }
  0xf8   : > { %705 = vrot.lane.b32.xlu0 %v493_v38, %s1217_s26 }
  0xfa   : > { %731 = vrot.lane.b32.xlu1 %v481_v34, %s1218_s27 }
  0xfc   : > { %733 = vrot.lane.b32.xlu0 %v485_v36, %s1218_s27 }
  0xfe   : > { %735 = vrot.lane.b32.xlu1 %v489_v37, %s1218_s27 }
 0x100   : > { %737 = vrot.lane.b32.xlu0 %v493_v38, %s1218_s27 }
 0x102   : > { %514 = vrot.lane.b32.xlu1 %v497_v41, %s1211_s16 }
 0x104   : > { %516 = vrot.lane.b32.xlu0 %v501_v42, %s1211_s16 }
 0x106   : > { %547 = vrot.lane.b32.xlu1 %v497_v41, %s1212_s21 }
 0x108   : > { %549 = vrot.lane.b32.xlu0 %v501_v42, %s1212_s21 }
 0x10a   : > { %579 = vrot.lane.b32.xlu1 %v497_v41, %s1213_s22 }
 0x10c   : > { %581 = vrot.lane.b32.xlu0 %v501_v42, %s1213_s22 }
 0x10e   : > { %611 = vrot.lane.b32.xlu1 %v497_v41, %s1214_s23 }
 0x110   : > { %613 = vrot.lane.b32.xlu0 %v501_v42, %s1214_s23 }
 0x112   : > { %643 = vrot.lane.b32.xlu1 %v497_v41, %s1215_s24 }
 0x114   : > { %645 = vrot.lane.b32.xlu0 %v501_v42, %s1215_s24  ;;  %v503_v43 = vpop.permute.xlu1 %502 }
 0x115   : > { %527 = vst.msk [vmem:[%s1314_s20 + $0x1] sm:$0x1] %vm526_vm2, %v503_v43 }
 0x116   : > { %v505_v44 = vpop.permute.xlu0 %504  ;;  %675 = vrot.lane.b32.xlu1 %v497_v41, %s1216_s25 }
 0x117   : > { %528 = vst.msk [vmem:[%s1314_s20 + $0x19] sm:$0x1] %vm526_vm2, %v505_v44 }
 0x118   : > { %677 = vrot.lane.b32.xlu0 %v501_v42, %s1216_s25  ;;  %v536_v45 = vpop.permute.xlu1 %535 }
 0x119   : > { %559 = vst.msk [vmem:[%s1314_s20 + $0x2] sm:$0x1] %vm526_vm2, %v536_v45 }
 0x11a   : > { %v538_v46 = vpop.permute.xlu0 %537  ;;  %707 = vrot.lane.b32.xlu1 %v497_v41, %s1217_s26 }
 0x11b   : > { %560 = vst.msk [vmem:[%s1314_s20 + $0x1a] sm:$0x1] %vm526_vm2, %v538_v46 }
 0x11c   : > { %709 = vrot.lane.b32.xlu0 %v501_v42, %s1217_s26  ;;  %v568_v47 = vpop.permute.xlu1 %567 }
 0x11d   : > { %591 = vst.msk [vmem:[%s1314_s20 + $0x3] sm:$0x1] %vm526_vm2, %v568_v47 }
 0x11e   : > { %v570_v48 = vpop.permute.xlu0 %569  ;;  %739 = vrot.lane.b32.xlu1 %v497_v41, %s1218_s27 }
 0x11f   : > { %592 = vst.msk [vmem:[%s1314_s20 + $0x1b] sm:$0x1] %vm526_vm2, %v570_v48 }
 0x120   : > { %741 = vrot.lane.b32.xlu0 %v501_v42, %s1218_s27  ;;  %v600_v51 = vpop.permute.xlu1 %599 }
 0x121   : > { %623 = vst.msk [vmem:[%s1314_s20 + $0x4] sm:$0x1] %vm526_vm2, %v600_v51 }
 0x122   : > { %v602_v54 = vpop.permute.xlu0 %601  ;;  %841 = vrot.lane.b32.xlu1 %v1479_v50, %s1211_s16 }
 0x123   : > { %624 = vst.msk [vmem:[%s1314_s20 + $0x1c] sm:$0x1] %vm526_vm2, %v602_v54 }
 0x124   : > { %843 = vrot.lane.b32.xlu0 %v1485_v53, %s1211_s16  ;;  %v632_v56 = vpop.permute.xlu1 %631 }
 0x125   : > { %655 = vst.msk [vmem:[%s1314_s20 + $0x5] sm:$0x1] %vm526_vm2, %v632_v56 }
 0x126   : > { %v634_v58 = vpop.permute.xlu0 %633  ;;  %845 = vrot.lane.b32.xlu1 %v1496_v55, %s1211_s16 }
 0x127   : > { %656 = vst.msk [vmem:[%s1314_s20 + $0x1d] sm:$0x1] %vm526_vm2, %v634_v58 }
 0x128   : > { %847 = vrot.lane.b32.xlu0 %v1499_v57, %s1211_s16  ;;  %v664_v61 = vpop.permute.xlu1 %663 }
 0x129   : > { %687 = vst.msk [vmem:[%s1314_s20 + $0x6] sm:$0x1] %vm526_vm2, %v664_v61 }
 0x12a   : > { %v666_v0 = vpop.permute.xlu0 %665  ;;  %849 = vrot.lane.b32.xlu1 %v1513_v60, %s1211_s16 }
 0x12b   : > { %688 = vst.msk [vmem:[%s1314_s20 + $0x1e] sm:$0x1] %vm526_vm2, %v666_v0 }
 0x12c   : > { %851 = vrot.lane.b32.xlu0 %v1519_v63, %s1211_s16  ;;  %v696_v2 = vpop.permute.xlu1 %695 }
 0x12d   : > { %719 = vst.msk [vmem:[%s1314_s20 + $0x7] sm:$0x1] %vm526_vm2, %v696_v2 }
 0x12e   : > { %v698_v5 = vpop.permute.xlu0 %697  ;;  %853 = vrot.lane.b32.xlu1 %v1530_v1, %s1211_s16 }
 0x12f   : > { %720 = vst.msk [vmem:[%s1314_s20 + $0x1f] sm:$0x1] %vm526_vm2, %v698_v5 }
 0x130   : > { %855 = vrot.lane.b32.xlu0 %v1533_v3, %s1211_s16  ;;  %v728_v6 = vpop.permute.xlu1 %727 }
 0x131   : > { %751 = vst.msk [vmem:[%s1314_s20 + $0x8] sm:$0x1] %vm526_vm2, %v728_v6 }
 0x132   : > { %v730_v7 = vpop.permute.xlu0 %729  ;;  %873 = vrot.lane.b32.xlu1 %v1479_v50, %s1212_s21 }
 0x133   : > { %752 = vst.msk [vmem:[%s1314_s20 + $0x20] sm:$0x1] %vm526_vm2, %v730_v7 }
 0x134   : > { %875 = vrot.lane.b32.xlu0 %v1485_v53, %s1212_s21  ;;  %v507_v31 = vpop.permute.xlu1 %506 }
 0x135   : > { %529 = vst.msk [vmem:[%s1314_s20 + $0x31] sm:$0x1] %vm526_vm2, %v507_v31 }
 0x136   : > { %v509_v4 = vpop.permute.xlu0 %508  ;;  %877 = vrot.lane.b32.xlu1 %v1496_v55, %s1212_s21 }
 0x137   : > { %530 = vst.msk [vmem:[%s1314_s20 + $0x49] sm:$0x1] %vm526_vm2, %v509_v4 }
 0x138   : > { %879 = vrot.lane.b32.xlu0 %v1499_v57, %s1212_s21  ;;  %v511_v8 = vpop.permute.xlu1 %510 }
 0x139   : > { %531 = vst.msk [vmem:[%s1314_s20 + $0x61] sm:$0x1] %vm526_vm2, %v511_v8 }
 0x13a   : > { %v513_v9 = vpop.permute.xlu0 %512  ;;  %881 = vrot.lane.b32.xlu1 %v1513_v60, %s1212_s21 }
 0x13b   : > { %532 = vst.msk [vmem:[%s1314_s20 + $0x79] sm:$0x1] %vm526_vm2, %v513_v9 }
 0x13c   : > { %883 = vrot.lane.b32.xlu0 %v1519_v63, %s1212_s21  ;;  %v540_v10 = vpop.permute.xlu1 %539 }
 0x13d   : > { %561 = vst.msk [vmem:[%s1314_s20 + $0x32] sm:$0x1] %vm526_vm2, %v540_v10 }
 0x13e   : > { %v542_v11 = vpop.permute.xlu0 %541  ;;  %885 = vrot.lane.b32.xlu1 %v1530_v1, %s1212_s21 }
 0x13f   : > { %562 = vst.msk [vmem:[%s1314_s20 + $0x4a] sm:$0x1] %vm526_vm2, %v542_v11 }
 0x140   : > { %887 = vrot.lane.b32.xlu0 %v1533_v3, %s1212_s21  ;;  %v544_v12 = vpop.permute.xlu1 %543 }
 0x141   : > { %563 = vst.msk [vmem:[%s1314_s20 + $0x62] sm:$0x1] %vm526_vm2, %v544_v12 }
 0x142   : > { %v546_v13 = vpop.permute.xlu0 %545  ;;  %905 = vrot.lane.b32.xlu1 %v1479_v50, %s1213_s22 }
 0x143   : > { %564 = vst.msk [vmem:[%s1314_s20 + $0x7a] sm:$0x1] %vm526_vm2, %v546_v13 }
 0x144   : > { %907 = vrot.lane.b32.xlu0 %v1485_v53, %s1213_s22  ;;  %v572_v14 = vpop.permute.xlu1 %571 }
 0x145   : > { %593 = vst.msk [vmem:[%s1314_s20 + $0x33] sm:$0x1] %vm526_vm2, %v572_v14 }
 0x146   : > { %v574_v15 = vpop.permute.xlu0 %573  ;;  %909 = vrot.lane.b32.xlu1 %v1496_v55, %s1213_s22 }
 0x147   : > { %594 = vst.msk [vmem:[%s1314_s20 + $0x4b] sm:$0x1] %vm526_vm2, %v574_v15 }
 0x148   : > { %911 = vrot.lane.b32.xlu0 %v1499_v57, %s1213_s22  ;;  %v576_v16 = vpop.permute.xlu1 %575 }
 0x149   : > { %595 = vst.msk [vmem:[%s1314_s20 + $0x63] sm:$0x1] %vm526_vm2, %v576_v16 }
 0x14a   : > { %v578_v17 = vpop.permute.xlu0 %577  ;;  %913 = vrot.lane.b32.xlu1 %v1513_v60, %s1213_s22 }
 0x14b   : > { %596 = vst.msk [vmem:[%s1314_s20 + $0x7b] sm:$0x1] %vm526_vm2, %v578_v17 }
 0x14c   : > { %915 = vrot.lane.b32.xlu0 %v1519_v63, %s1213_s22  ;;  %v604_v18 = vpop.permute.xlu1 %603 }
 0x14d   : > { %625 = vst.msk [vmem:[%s1314_s20 + $0x34] sm:$0x1] %vm526_vm2, %v604_v18 }
 0x14e   : > { %v606_v19 = vpop.permute.xlu0 %605  ;;  %917 = vrot.lane.b32.xlu1 %v1530_v1, %s1213_s22 }
 0x14f   : > { %626 = vst.msk [vmem:[%s1314_s20 + $0x4c] sm:$0x1] %vm526_vm2, %v606_v19 }
 0x150   : > { %919 = vrot.lane.b32.xlu0 %v1533_v3, %s1213_s22  ;;  %v608_v20 = vpop.permute.xlu1 %607 }
 0x151   : > { %627 = vst.msk [vmem:[%s1314_s20 + $0x64] sm:$0x1] %vm526_vm2, %v608_v20 }
 0x152   : > { %v610_v21 = vpop.permute.xlu0 %609  ;;  %937 = vrot.lane.b32.xlu1 %v1479_v50, %s1214_s23 }
 0x153   : > { %628 = vst.msk [vmem:[%s1314_s20 + $0x7c] sm:$0x1] %vm526_vm2, %v610_v21 }
 0x154   : > { %939 = vrot.lane.b32.xlu0 %v1485_v53, %s1214_s23  ;;  %v636_v22 = vpop.permute.xlu1 %635 }
 0x155   : > { %657 = vst.msk [vmem:[%s1314_s20 + $0x35] sm:$0x1] %vm526_vm2, %v636_v22 }
 0x156   : > { %v638_v23 = vpop.permute.xlu0 %637  ;;  %941 = vrot.lane.b32.xlu1 %v1496_v55, %s1214_s23 }
 0x157   : > { %658 = vst.msk [vmem:[%s1314_s20 + $0x4d] sm:$0x1] %vm526_vm2, %v638_v23 }
 0x158   : > { %943 = vrot.lane.b32.xlu0 %v1499_v57, %s1214_s23  ;;  %v640_v24 = vpop.permute.xlu1 %639 }
 0x159   : > { %659 = vst.msk [vmem:[%s1314_s20 + $0x65] sm:$0x1] %vm526_vm2, %v640_v24 }
 0x15a   : > { %v642_v25 = vpop.permute.xlu0 %641  ;;  %945 = vrot.lane.b32.xlu1 %v1513_v60, %s1214_s23 }
 0x15b   : > { %660 = vst.msk [vmem:[%s1314_s20 + $0x7d] sm:$0x1] %vm526_vm2, %v642_v25 }
 0x15c   : > { %947 = vrot.lane.b32.xlu0 %v1519_v63, %s1214_s23  ;;  %v668_v26 = vpop.permute.xlu1 %667 }
 0x15d   : > { %689 = vst.msk [vmem:[%s1314_s20 + $0x36] sm:$0x1] %vm526_vm2, %v668_v26 }
 0x15e   : > { %v670_v27 = vpop.permute.xlu0 %669  ;;  %949 = vrot.lane.b32.xlu1 %v1530_v1, %s1214_s23 }
 0x15f   : > { %690 = vst.msk [vmem:[%s1314_s20 + $0x4e] sm:$0x1] %vm526_vm2, %v670_v27 }
 0x160   : > { %951 = vrot.lane.b32.xlu0 %v1533_v3, %s1214_s23  ;;  %v672_v28 = vpop.permute.xlu1 %671 }
 0x161   : > { %691 = vst.msk [vmem:[%s1314_s20 + $0x66] sm:$0x1] %vm526_vm2, %v672_v28 }
 0x162   : > { %v674_v29 = vpop.permute.xlu0 %673  ;;  %969 = vrot.lane.b32.xlu1 %v1479_v50, %s1215_s24 }
 0x163   : > { %692 = vst.msk [vmem:[%s1314_s20 + $0x7e] sm:$0x1] %vm526_vm2, %v674_v29 }
 0x164   : > { %971 = vrot.lane.b32.xlu0 %v1485_v53, %s1215_s24  ;;  %v700_v30 = vpop.permute.xlu1 %699 }
 0x165   : > { %721 = vst.msk [vmem:[%s1314_s20 + $0x37] sm:$0x1] %vm526_vm2, %v700_v30 }
 0x166   : > { %v702_v32 = vpop.permute.xlu0 %701  ;;  %973 = vrot.lane.b32.xlu1 %v1496_v55, %s1215_s24 }
 0x167   : > { %722 = vst.msk [vmem:[%s1314_s20 + $0x4f] sm:$0x1] %vm526_vm2, %v702_v32 }
 0x168   : > { %975 = vrot.lane.b32.xlu0 %v1499_v57, %s1215_s24  ;;  %v704_v33 = vpop.permute.xlu1 %703 }
 0x169   : > { %723 = vst.msk [vmem:[%s1314_s20 + $0x67] sm:$0x1] %vm526_vm2, %v704_v33 }
 0x16a   : > { %v706_v34 = vpop.permute.xlu0 %705  ;;  %977 = vrot.lane.b32.xlu1 %v1513_v60, %s1215_s24 }
 0x16b   : > { %724 = vst.msk [vmem:[%s1314_s20 + $0x7f] sm:$0x1] %vm526_vm2, %v706_v34 }
 0x16c   : > { %979 = vrot.lane.b32.xlu0 %v1519_v63, %s1215_s24  ;;  %v732_v35 = vpop.permute.xlu1 %731 }
 0x16d   : > { %753 = vst.msk [vmem:[%s1314_s20 + $0x38] sm:$0x1] %vm526_vm2, %v732_v35 }
 0x16e   : > { %v734_v36 = vpop.permute.xlu0 %733  ;;  %981 = vrot.lane.b32.xlu1 %v1530_v1, %s1215_s24 }
 0x16f   : > { %754 = vst.msk [vmem:[%s1314_s20 + $0x50] sm:$0x1] %vm526_vm2, %v734_v36 }
 0x170   : > { %983 = vrot.lane.b32.xlu0 %v1533_v3, %s1215_s24  ;;  %v736_v37 = vpop.permute.xlu1 %735 }
 0x171   : > { %755 = vst.msk [vmem:[%s1314_s20 + $0x68] sm:$0x1] %vm526_vm2, %v736_v37 }
 0x172   : > { %v738_v38 = vpop.permute.xlu0 %737  ;;  %1001 = vrot.lane.b32.xlu1 %v1479_v50, %s1216_s25 }
 0x173   : > { %756 = vst.msk [vmem:[%s1314_s20 + $0x80] sm:$0x1] %vm526_vm2, %v738_v38 }
 0x174   : > { %1003 = vrot.lane.b32.xlu0 %v1485_v53, %s1216_s25  ;;  %v515_v39 = vpop.permute.xlu1 %514 }
 0x175   : > { %533 = vst.msk [vmem:[%s1314_s20 + $0x91] sm:$0x1] %vm526_vm2, %v515_v39 }
 0x176   : > { %v517_v40 = vpop.permute.xlu0 %516  ;;  %1005 = vrot.lane.b32.xlu1 %v1496_v55, %s1216_s25 }
 0x177   : > { %534 = vst.msk [vmem:[%s1314_s20 + $0xa9] sm:$0x1] %vm526_vm2, %v517_v40 }
 0x178   : > { %1007 = vrot.lane.b32.xlu0 %v1499_v57, %s1216_s25  ;;  %v548_v41 = vpop.permute.xlu1 %547 }
 0x179   : > { %565 = vst.msk [vmem:[%s1314_s20 + $0x92] sm:$0x1] %vm526_vm2, %v548_v41 }
 0x17a   : > { %v550_v42 = vpop.permute.xlu0 %549  ;;  %1009 = vrot.lane.b32.xlu1 %v1513_v60, %s1216_s25 }
 0x17b   : > { %566 = vst.msk [vmem:[%s1314_s20 + $0xaa] sm:$0x1] %vm526_vm2, %v550_v42 }
 0x17c   : > { %1011 = vrot.lane.b32.xlu0 %v1519_v63, %s1216_s25  ;;  %v580_v43 = vpop.permute.xlu1 %579 }
 0x17d   : > { %597 = vst.msk [vmem:[%s1314_s20 + $0x93] sm:$0x1] %vm526_vm2, %v580_v43 }
 0x17e   : > { %v582_v44 = vpop.permute.xlu0 %581  ;;  %1013 = vrot.lane.b32.xlu1 %v1530_v1, %s1216_s25 }
 0x17f   : > { %598 = vst.msk [vmem:[%s1314_s20 + $0xab] sm:$0x1] %vm526_vm2, %v582_v44 }
 0x180   : > { %1015 = vrot.lane.b32.xlu0 %v1533_v3, %s1216_s25  ;;  %v612_v45 = vpop.permute.xlu1 %611 }
 0x181   : > { %629 = vst.msk [vmem:[%s1314_s20 + $0x94] sm:$0x1] %vm526_vm2, %v612_v45 }
 0x182   : > { %v614_v46 = vpop.permute.xlu0 %613  ;;  %1033 = vrot.lane.b32.xlu1 %v1479_v50, %s1217_s26 }
 0x183   : > { %630 = vst.msk [vmem:[%s1314_s20 + $0xac] sm:$0x1] %vm526_vm2, %v614_v46 }
 0x184   : > { %1035 = vrot.lane.b32.xlu0 %v1485_v53, %s1217_s26  ;;  %v644_v47 = vpop.permute.xlu1 %643 }
 0x185   : > { %661 = vst.msk [vmem:[%s1314_s20 + $0x95] sm:$0x1] %vm526_vm2, %v644_v47 }
 0x186   : > { %v646_v48 = vpop.permute.xlu0 %645  ;;  %1037 = vrot.lane.b32.xlu1 %v1496_v55, %s1217_s26 }
 0x187   : > { %662 = vst.msk [vmem:[%s1314_s20 + $0xad] sm:$0x1] %vm526_vm2, %v646_v48 }
 0x188   : > { %1039 = vrot.lane.b32.xlu0 %v1499_v57, %s1217_s26  ;;  %v676_v49 = vpop.permute.xlu1 %675 }
 0x189   : > { %693 = vst.msk [vmem:[%s1314_s20 + $0x96] sm:$0x1] %vm526_vm2, %v676_v49 }
 0x18a   : > { %v678_v51 = vpop.permute.xlu0 %677  ;;  %1041 = vrot.lane.b32.xlu1 %v1513_v60, %s1217_s26 }
 0x18b   : > { %694 = vst.msk [vmem:[%s1314_s20 + $0xae] sm:$0x1] %vm526_vm2, %v678_v51 }
 0x18c   : > { %1043 = vrot.lane.b32.xlu0 %v1519_v63, %s1217_s26  ;;  %v708_v52 = vpop.permute.xlu1 %707 }
 0x18d   : > { %725 = vst.msk [vmem:[%s1314_s20 + $0x97] sm:$0x1] %vm526_vm2, %v708_v52 }
 0x18e   : > { %v710_v54 = vpop.permute.xlu0 %709  ;;  %1045 = vrot.lane.b32.xlu1 %v1530_v1, %s1217_s26 }
 0x18f   : > { %726 = vst.msk [vmem:[%s1314_s20 + $0xaf] sm:$0x1] %vm526_vm2, %v710_v54 }
 0x190   : > { %1047 = vrot.lane.b32.xlu0 %v1533_v3, %s1217_s26  ;;  %v740_v56 = vpop.permute.xlu1 %739 }
 0x191   : > { %757 = vst.msk [vmem:[%s1314_s20 + $0x98] sm:$0x1] %vm526_vm2, %v740_v56 }
 0x192   : > { %v742_v58 = vpop.permute.xlu0 %741  ;;  %1065 = vrot.lane.b32.xlu1 %v1479_v50, %s1218_s27 }
 0x193   : > { %758 = vst.msk [vmem:[%s1314_s20 + $0xb0] sm:$0x1] %vm526_vm2, %v742_v58 }
 0x194   : > { %1067 = vrot.lane.b32.xlu0 %v1485_v53, %s1218_s27  ;;  %v842_v59 = vpop.permute.xlu1 %841 }
 0x195   : > { %865 = vst.msk [vmem:[%s1314_s20 + $0x9] sm:$0x1] %vm526_vm2, %v842_v59 }
 0x196   : > { %v844_v61 = vpop.permute.xlu0 %843  ;;  %1069 = vrot.lane.b32.xlu1 %v1496_v55, %s1218_s27 }
 0x197   : > { %866 = vst.msk [vmem:[%s1314_s20 + $0x21] sm:$0x1] %vm526_vm2, %v844_v61 }
 0x198   : > { %1071 = vrot.lane.b32.xlu0 %v1499_v57, %s1218_s27  ;;  %v846_v50 = vpop.permute.xlu1 %845 }
 0x199   : > { %867 = vst.msk [vmem:[%s1314_s20 + $0x39] sm:$0x1] %vm526_vm2, %v846_v50 }
 0x19a   : > { %v848_v53 = vpop.permute.xlu0 %847  ;;  %1073 = vrot.lane.b32.xlu1 %v1513_v60, %s1218_s27 }
 0x19b   : > { %868 = vst.msk [vmem:[%s1314_s20 + $0x51] sm:$0x1] %vm526_vm2, %v848_v53 }
 0x19c   : > { %1075 = vrot.lane.b32.xlu0 %v1519_v63, %s1218_s27  ;;  %v850_v55 = vpop.permute.xlu1 %849 }
 0x19d   : > { %869 = vst.msk [vmem:[%s1314_s20 + $0x69] sm:$0x1] %vm526_vm2, %v850_v55 }
 0x19e   : > { %v852_v57 = vpop.permute.xlu0 %851  ;;  %1077 = vrot.lane.b32.xlu1 %v1530_v1, %s1218_s27 }
 0x19f   : > { %870 = vst.msk [vmem:[%s1314_s20 + $0x81] sm:$0x1] %vm526_vm2, %v852_v57 }
 0x1a0   : > { %1079 = vrot.lane.b32.xlu0 %v1533_v3, %s1218_s27  ;;  %v854_v60 = vpop.permute.xlu1 %853 }
 0x1a1   : > { %871 = vst.msk [vmem:[%s1314_s20 + $0x99] sm:$0x1] %vm526_vm2, %v854_v60 }
 0x1a2   : > { %v856_v62 = vpop.permute.xlu0 %855 }
 0x1a3   : > { %872 = vst.msk [vmem:[%s1314_s20 + $0xb1] sm:$0x1] %vm526_vm2, %v856_v62 }
 0x1a4   : > { %v874_v63 = vpop.permute.xlu1 %873 }
 0x1a5   : > { %897 = vst.msk [vmem:[%s1314_s20 + $0xa] sm:$0x1] %vm526_vm2, %v874_v63 }
 0x1a6   : > { %v876_v0 = vpop.permute.xlu0 %875 }
 0x1a7   : > { %898 = vst.msk [vmem:[%s1314_s20 + $0x22] sm:$0x1] %vm526_vm2, %v876_v0 }
 0x1a8   : > { %v878_v1 = vpop.permute.xlu1 %877 }
 0x1a9   : > { %899 = vst.msk [vmem:[%s1314_s20 + $0x3a] sm:$0x1] %vm526_vm2, %v878_v1 }
 0x1aa   : > { %v880_v2 = vpop.permute.xlu0 %879 }
 0x1ab   : > { %900 = vst.msk [vmem:[%s1314_s20 + $0x52] sm:$0x1] %vm526_vm2, %v880_v2 }
 0x1ac   : > { %v882_v3 = vpop.permute.xlu1 %881 }
 0x1ad   : > { %901 = vst.msk [vmem:[%s1314_s20 + $0x6a] sm:$0x1] %vm526_vm2, %v882_v3 }
 0x1ae   : > { %v884_v5 = vpop.permute.xlu0 %883 }
 0x1af   : > { %902 = vst.msk [vmem:[%s1314_s20 + $0x82] sm:$0x1] %vm526_vm2, %v884_v5 }
 0x1b0   : > { %v886_v6 = vpop.permute.xlu1 %885 }
 0x1b1   : > { %903 = vst.msk [vmem:[%s1314_s20 + $0x9a] sm:$0x1] %vm526_vm2, %v886_v6 }
 0x1b2   : > { %v888_v7 = vpop.permute.xlu0 %887 }
 0x1b3   : > { %904 = vst.msk [vmem:[%s1314_s20 + $0xb2] sm:$0x1] %vm526_vm2, %v888_v7 }
 0x1b4   : > { %v906_v31 = vpop.permute.xlu1 %905 }
 0x1b5   : > { %929 = vst.msk [vmem:[%s1314_s20 + $0xb] sm:$0x1] %vm526_vm2, %v906_v31 }
 0x1b6   : > { %v908_v4 = vpop.permute.xlu0 %907 }
 0x1b7   : > { %930 = vst.msk [vmem:[%s1314_s20 + $0x23] sm:$0x1] %vm526_vm2, %v908_v4 }
 0x1b8   : > { %v910_v8 = vpop.permute.xlu1 %909 }
 0x1b9   : > { %931 = vst.msk [vmem:[%s1314_s20 + $0x3b] sm:$0x1] %vm526_vm2, %v910_v8 }
 0x1ba   : > { %v912_v9 = vpop.permute.xlu0 %911 }
 0x1bb   : > { %932 = vst.msk [vmem:[%s1314_s20 + $0x53] sm:$0x1] %vm526_vm2, %v912_v9 }
 0x1bc   : > { %v914_v10 = vpop.permute.xlu1 %913 }
 0x1bd   : > { %933 = vst.msk [vmem:[%s1314_s20 + $0x6b] sm:$0x1] %vm526_vm2, %v914_v10 }
 0x1be   : > { %v916_v11 = vpop.permute.xlu0 %915 }
 0x1bf   : > { %934 = vst.msk [vmem:[%s1314_s20 + $0x83] sm:$0x1] %vm526_vm2, %v916_v11 }
 0x1c0   : > { %v918_v12 = vpop.permute.xlu1 %917 }
 0x1c1   : > { %935 = vst.msk [vmem:[%s1314_s20 + $0x9b] sm:$0x1] %vm526_vm2, %v918_v12 }
 0x1c2   : > { %v920_v13 = vpop.permute.xlu0 %919 }
 0x1c3   : > { %936 = vst.msk [vmem:[%s1314_s20 + $0xb3] sm:$0x1] %vm526_vm2, %v920_v13 }
 0x1c4   : > { %v938_v14 = vpop.permute.xlu1 %937 }
 0x1c5   : > { %961 = vst.msk [vmem:[%s1314_s20 + $0xc] sm:$0x1] %vm526_vm2, %v938_v14 }
 0x1c6   : > { %v940_v15 = vpop.permute.xlu0 %939 }
 0x1c7   : > { %962 = vst.msk [vmem:[%s1314_s20 + $0x24] sm:$0x1] %vm526_vm2, %v940_v15 }
 0x1c8   : > { %v942_v16 = vpop.permute.xlu1 %941 }
 0x1c9   : > { %963 = vst.msk [vmem:[%s1314_s20 + $0x3c] sm:$0x1] %vm526_vm2, %v942_v16 }
 0x1ca   : > { %v944_v17 = vpop.permute.xlu0 %943 }
 0x1cb   : > { %964 = vst.msk [vmem:[%s1314_s20 + $0x54] sm:$0x1] %vm526_vm2, %v944_v17 }
 0x1cc   : > { %v946_v18 = vpop.permute.xlu1 %945 }
 0x1cd   : > { %965 = vst.msk [vmem:[%s1314_s20 + $0x6c] sm:$0x1] %vm526_vm2, %v946_v18 }
 0x1ce   : > { %v948_v19 = vpop.permute.xlu0 %947 }
 0x1cf   : > { %966 = vst.msk [vmem:[%s1314_s20 + $0x84] sm:$0x1] %vm526_vm2, %v948_v19 }
 0x1d0   : > { %v950_v20 = vpop.permute.xlu1 %949 }
 0x1d1   : > { %967 = vst.msk [vmem:[%s1314_s20 + $0x9c] sm:$0x1] %vm526_vm2, %v950_v20 }
 0x1d2   : > { %v952_v21 = vpop.permute.xlu0 %951 }
 0x1d3   : > { %968 = vst.msk [vmem:[%s1314_s20 + $0xb4] sm:$0x1] %vm526_vm2, %v952_v21 }
 0x1d4   : > { %v970_v22 = vpop.permute.xlu1 %969 }
 0x1d5   : > { %993 = vst.msk [vmem:[%s1314_s20 + $0xd] sm:$0x1] %vm526_vm2, %v970_v22 }
 0x1d6   : > { %v972_v23 = vpop.permute.xlu0 %971 }
 0x1d7   : > { %994 = vst.msk [vmem:[%s1314_s20 + $0x25] sm:$0x1] %vm526_vm2, %v972_v23 }
 0x1d8   : > { %v974_v24 = vpop.permute.xlu1 %973 }
 0x1d9   : > { %995 = vst.msk [vmem:[%s1314_s20 + $0x3d] sm:$0x1] %vm526_vm2, %v974_v24 }
 0x1da   : > { %v976_v25 = vpop.permute.xlu0 %975 }
 0x1db   : > { %996 = vst.msk [vmem:[%s1314_s20 + $0x55] sm:$0x1] %vm526_vm2, %v976_v25 }
 0x1dc   : > { %v978_v26 = vpop.permute.xlu1 %977 }
 0x1dd   : > { %997 = vst.msk [vmem:[%s1314_s20 + $0x6d] sm:$0x1] %vm526_vm2, %v978_v26 }
 0x1de   : > { %v980_v27 = vpop.permute.xlu0 %979 }
 0x1df   : > { %998 = vst.msk [vmem:[%s1314_s20 + $0x85] sm:$0x1] %vm526_vm2, %v980_v27 }
 0x1e0   : > { %v982_v28 = vpop.permute.xlu1 %981 }
 0x1e1   : > { %999 = vst.msk [vmem:[%s1314_s20 + $0x9d] sm:$0x1] %vm526_vm2, %v982_v28 }
 0x1e2   : > { %v984_v29 = vpop.permute.xlu0 %983 }
 0x1e3   : > { %1000 = vst.msk [vmem:[%s1314_s20 + $0xb5] sm:$0x1] %vm526_vm2, %v984_v29 }
 0x1e4   : > { %v1002_v30 = vpop.permute.xlu1 %1001 }
 0x1e5   : > { %1025 = vst.msk [vmem:[%s1314_s20 + $0xe] sm:$0x1] %vm526_vm2, %v1002_v30 }
 0x1e6   : > { %v1004_v32 = vpop.permute.xlu0 %1003 }
 0x1e7   : > { %1026 = vst.msk [vmem:[%s1314_s20 + $0x26] sm:$0x1] %vm526_vm2, %v1004_v32 }
 0x1e8   : > { %v1006_v33 = vpop.permute.xlu1 %1005 }
 0x1e9   : > { %1027 = vst.msk [vmem:[%s1314_s20 + $0x3e] sm:$0x1] %vm526_vm2, %v1006_v33 }
 0x1ea   : > { %v1008_v34 = vpop.permute.xlu0 %1007 }
 0x1eb   : > { %1028 = vst.msk [vmem:[%s1314_s20 + $0x56] sm:$0x1] %vm526_vm2, %v1008_v34 }
 0x1ec   : > { %v1010_v35 = vpop.permute.xlu1 %1009 }
 0x1ed   : > { %1029 = vst.msk [vmem:[%s1314_s20 + $0x6e] sm:$0x1] %vm526_vm2, %v1010_v35 }
 0x1ee   : > { %v1012_v36 = vpop.permute.xlu0 %1011 }
 0x1ef   : > { %1030 = vst.msk [vmem:[%s1314_s20 + $0x86] sm:$0x1] %vm526_vm2, %v1012_v36 }
 0x1f0   : > { %v1014_v37 = vpop.permute.xlu1 %1013 }
 0x1f1   : > { %1031 = vst.msk [vmem:[%s1314_s20 + $0x9e] sm:$0x1] %vm526_vm2, %v1014_v37 }
 0x1f2   : > { %v1016_v38 = vpop.permute.xlu0 %1015 }
 0x1f3   : > { %1032 = vst.msk [vmem:[%s1314_s20 + $0xb6] sm:$0x1] %vm526_vm2, %v1016_v38 }
 0x1f4   : > { %v1034_v39 = vpop.permute.xlu1 %1033 }
 0x1f5   : > { %1057 = vst.msk [vmem:[%s1314_s20 + $0xf] sm:$0x1] %vm526_vm2, %v1034_v39 }
 0x1f6   : > { %v1036_v40 = vpop.permute.xlu0 %1035 }
 0x1f7   : > { %1058 = vst.msk [vmem:[%s1314_s20 + $0x27] sm:$0x1] %vm526_vm2, %v1036_v40 }
 0x1f8   : > { %v1038_v41 = vpop.permute.xlu1 %1037 }
 0x1f9   : > { %1059 = vst.msk [vmem:[%s1314_s20 + $0x3f] sm:$0x1] %vm526_vm2, %v1038_v41 }
 0x1fa   : > { %v1040_v42 = vpop.permute.xlu0 %1039 }
 0x1fb   : > { %1060 = vst.msk [vmem:[%s1314_s20 + $0x57] sm:$0x1] %vm526_vm2, %v1040_v42 }
 0x1fc   : > { %v1042_v43 = vpop.permute.xlu1 %1041 }
 0x1fd   : > { %1061 = vst.msk [vmem:[%s1314_s20 + $0x6f] sm:$0x1] %vm526_vm2, %v1042_v43 }
 0x1fe   : > { %v1044_v44 = vpop.permute.xlu0 %1043 }
 0x1ff   : > { %1062 = vst.msk [vmem:[%s1314_s20 + $0x87] sm:$0x1] %vm526_vm2, %v1044_v44 }
 0x200   : > { %v1046_v45 = vpop.permute.xlu1 %1045 }
 0x201   : > { %1063 = vst.msk [vmem:[%s1314_s20 + $0x9f] sm:$0x1] %vm526_vm2, %v1046_v45 }
 0x202   : > { %v1048_v46 = vpop.permute.xlu0 %1047 }
 0x203   : > { %1064 = vst.msk [vmem:[%s1314_s20 + $0xb7] sm:$0x1] %vm526_vm2, %v1048_v46 }
 0x204   : > { %v1066_v47 = vpop.permute.xlu1 %1065 }
 0x205   : > { %1089 = vst.msk [vmem:[%s1314_s20 + $0x10] sm:$0x1] %vm526_vm2, %v1066_v47 }
 0x206   : > { %v1068_v48 = vpop.permute.xlu0 %1067 }
 0x207   : > { %1090 = vst.msk [vmem:[%s1314_s20 + $0x28] sm:$0x1] %vm526_vm2, %v1068_v48 }
 0x208   : > { %v1070_v49 = vpop.permute.xlu1 %1069 }
 0x209   : > { %1091 = vst.msk [vmem:[%s1314_s20 + $0x40] sm:$0x1] %vm526_vm2, %v1070_v49 }
 0x20a   : > { %v1072_v51 = vpop.permute.xlu0 %1071 }
 0x20b   : > { %1092 = vst.msk [vmem:[%s1314_s20 + $0x58] sm:$0x1] %vm526_vm2, %v1072_v51 }
 0x20c   : > { %v1074_v52 = vpop.permute.xlu1 %1073 }
 0x20d   : > { %1093 = vst.msk [vmem:[%s1314_s20 + $0x70] sm:$0x1] %vm526_vm2, %v1074_v52 }
 0x20e   : > { %v1076_v54 = vpop.permute.xlu0 %1075 }
 0x20f   : > { %1094 = vst.msk [vmem:[%s1314_s20 + $0x88] sm:$0x1] %vm526_vm2, %v1076_v54 }
 0x210   : > { %v1078_v56 = vpop.permute.xlu1 %1077 }
 0x211   : > { %1095 = vst.msk [vmem:[%s1314_s20 + $0xa0] sm:$0x1] %vm526_vm2, %v1078_v56 }
 0x212   : > { %v1080_v58 = vpop.permute.xlu0 %1079 }
 0x213   : > { %1096 = vst.msk [vmem:[%s1314_s20 + $0xb8] sm:$0x1] %vm526_vm2, %v1080_v58 }
 0x214 PF: > { %s14_s15 = sadd.s32 1, %s1204_s15  }
 0x215   : > { %p11_p4 = scmp.ge.s32.totalorder %s14_s15, 4  }
 0x217   :  { %13 = sbr.rel (!%p11_p4) target bundleno = 1 (0x1), region = 66 }

</bundles_post_ra>
